<compile_context>
chip_gen: v5e
topology: v5e:2x2
jax: 0.10.0
libtpu: 0.0.40
codegen_flags: <defaults>
</compile_context>

<pallas_src>
import re

import jax
import jax.numpy as jnp
import numpy as np
from jax.experimental import pallas as pl
from jax.experimental.pallas import tpu as pltpu


# --------------------------- chip detection (cached) ------------------------

_TPU_INFO_CACHE = None


def _tpu_info():
    """Best-effort (generation-derived) tuning knobs: (num_cores, use_bf16, target_rows)."""
    global _TPU_INFO_CACHE
    if _TPU_INFO_CACHE is not None:
        return _TPU_INFO_CACHE
    gen = None
    try:
        kind = jax.devices()[0].device_kind.lower()
        m = re.search(r"v(\d+)", kind)
        if m:
            gen = int(m.group(1))
    except Exception:
        pass
    num_cores = 2 if (gen is not None and gen >= 7) else 1      # v7x: 2 TCs/chip
    use_bf16 = gen is not None and gen >= 6                     # v6e/v7x MXU bf16 fast path
    target_rows = 128 if gen == 5 else 256                      # MXU row-fill target per step
    _TPU_INFO_CACHE = (num_cores, use_bf16, target_rows)
    return _TPU_INFO_CACHE


# ----------------------------- Pallas kernel --------------------------------

def equivar_drift_kernel(x_ref,
                         w1_ref, b1_ref,     # fused layer 1 + residual: (d, 2C+d), (1, C)
                         w2_ref, b2_ref,     # fused layer 2:            (C, 2C),   (1, C)
                         w3_ref, b3_ref,     # fused layer 3:            (C, 2d),   (1, d)
                         out_ref):
    tb, n, d = x_ref.shape          # static block shape: (TB, N, d)
    rows = tb * n
    c = b1_ref.shape[-1]
    mm_dtype = w1_ref.dtype         # bf16 on v6e/v7x, f32 otherwise

    x3 = x_ref[...]                              # (TB, N, d) f32
    x = x3.reshape(rows, d)                      # collapse leading/sublane dims only

    # ---- layer 1 (+ residual fused into the same MXU push) ----
    # z1 = x @ [Wg1 | Wl1 | Wres] : (rows, 2C + d), accumulated in f32.
    z1 = jnp.dot(x.astype(mm_dtype), w1_ref[...],
                 preferred_element_type=jnp.float32)
    g1 = z1[:, :c].reshape(tb, n, c)                              # Gamma(x)
    l1 = z1[:, c:2 * c].reshape(tb, n, c)                         # x @ Lambda
    res = z1[:, 2 * c:]                                           # x @ Wres, (rows, d)
    # mean over the set axis N, per batch element (== Lambda(mean(x)))
    h = g1 + b1_ref[...] + jnp.mean(l1, axis=1, keepdims=True)
    h = jnp.clip(h, -1.0, 1.0)                                    # Hardtanh (f32)

    # ---- layer 2 ----
    z2 = jnp.dot(h.reshape(rows, c).astype(mm_dtype), w2_ref[...],
                 preferred_element_type=jnp.float32)              # (rows, 2C)
    g2 = z2[:, :c].reshape(tb, n, c)
    l2 = z2[:, c:].reshape(tb, n, c)
    h = g2 + b2_ref[...] + jnp.mean(l2, axis=1, keepdims=True)
    h = jnp.clip(h, -1.0, 1.0)                                    # Hardtanh (f32)

    # ---- layer 3 ----
    z3 = jnp.dot(h.reshape(rows, c).astype(mm_dtype), w3_ref[...],
                 preferred_element_type=jnp.float32)              # (rows, 2d)
    g3 = z3[:, :d].reshape(tb, n, d)
    l3 = z3[:, d:].reshape(tb, n, d)
    h = g3 + b3_ref[...] + jnp.mean(l3, axis=1, keepdims=True)

    # out = phi(x) + x @ Wres
    out_ref[...] = (h + res.reshape(tb, n, d)).astype(out_ref.dtype)
    # TODO(synk): lane-dense output repack (last dim -> multiple of 128) and
    # 128-aligned Gamma/Lambda split only pay off once N*d / C approach 128;
    # skipped at these shapes to keep Mosaic lowering on well-trodden paths.


# ---------------------------- one-time weight prep ---------------------------

def prepare_params(params, use_bf16=None):
    """Fuse [Gamma | Lambda (| residual)] weights per layer and (optionally)
    pre-cast them to bf16.  Call ONCE per parameter set (hoisted out of the
    forward path so jit doesn't re-materialize weight copies every call)."""
    if use_bf16 is None:
        _, use_bf16, _ = _tpu_info()
    mmdt = jnp.bfloat16 if use_bf16 else jnp.float32
    w1f = jnp.concatenate([params["wg1"], params["wl1"], params["wres"]],
                          axis=1).astype(mmdt)                    # (d, 2C + d)
    w2f = jnp.concatenate([params["wg2"], params["wl2"]], axis=1).astype(mmdt)  # (C, 2C)
    w3f = jnp.concatenate([params["wg3"], params["wl3"]], axis=1).astype(mmdt)  # (C, 2d)
    return {
        "w1f": w1f, "b1": params["bg1"].astype(jnp.float32),
        "w2f": w2f, "b2": params["bg2"].astype(jnp.float32),
        "w3f": w3f, "b3": params["bg3"].astype(jnp.float32),
    }


# ------------------------------ tile selection -------------------------------

def _pick_batch_tile(B, N, num_cores, target_rows):
    divs = [t for t in range(1, B + 1) if B % t == 0]
    # Keep at least min(num_cores, B) grid steps so the "parallel" axis can be
    # sharded across TensorCores on multi-TC chips (v7x).
    min_steps = min(num_cores, B)
    cand = [t for t in divs if B // t >= min_steps] or divs
    # Smallest tile whose rows = TB*N fill the MXU row target; otherwise the
    # largest admissible tile (fewest per-step overheads) -- never TB=1 cliffs
    # for prime B.
    big_enough = [t for t in cand if t * N >= target_rows]
    return min(big_enough) if big_enough else max(cand)


# --------------------------------- wrapper -----------------------------------

def equivar_drift(x, prepped, batch_tile=None):
    B, N, d = x.shape
    C = prepped["b1"].shape[-1]
    num_cores, _, target_rows = _tpu_info()

    if batch_tile is None:
        batch_tile = _pick_batch_tile(B, N, num_cores, target_rows)
    tb = batch_tile
    assert B % tb == 0, "batch_tile must divide B"
    grid = (B // tb,)

    def wspec(shape):
        zeros = (0,) * len(shape)
        return pl.BlockSpec(shape, lambda i, z=zeros: z)   # constant -> VMEM-resident

    in_specs = [
        pl.BlockSpec((tb, N, d), lambda i: (i, 0, 0)),      # x: one batch tile per step
        wspec(prepped["w1f"].shape), wspec((1, C)),         # layer 1 + residual
        wspec(prepped["w2f"].shape), wspec((1, C)),         # layer 2
        wspec(prepped["w3f"].shape), wspec((1, d)),         # layer 3
    ]
    out_spec = pl.BlockSpec((tb, N, d), lambda i: (i, 0, 0))

    fn = pl.pallas_call(
        equivar_drift_kernel,
        out_shape=jax.ShapeDtypeStruct((B, N, d), x.dtype),
        grid=grid,
        in_specs=in_specs,
        out_specs=out_spec,
        compiler_params=pltpu.CompilerParams(
            dimension_semantics=("parallel",)),
    )
    return fn(x,
              prepped["w1f"], prepped["b1"],
              prepped["w2f"], prepped["b2"],
              prepped["w3f"], prepped["b3"])


# --------------------------- parameter construction --------------------------

def make_params(d, num_channels, key, zero_init_last=True):
    """Parameters mirroring EquivarDrift.__init__.

    PyTorch Linear stores weight as (out, in); we keep the transposed (in, out)
    form so the kernel computes `x @ W` directly.  With zero_init_last=True the
    last PermEqMean is zero-initialized and the residual is -I, exactly as in
    __init__.  zero_init_last=False gives random layer-3 / residual weights so
    the numerical test exercises every matmul path.
    """
    C = num_channels
    k = jax.random.split(key, 10)
    s1 = 1.0 / np.sqrt(d)
    s2 = 1.0 / np.sqrt(C)
    params = {
        # PermEqMean(d, C)
        "wg1": jax.random.uniform(k[0], (d, C), jnp.float32, -s1, s1),
        "bg1": jax.random.uniform(k[1], (1, C), jnp.float32, -s1, s1),
        "wl1": jax.random.uniform(k[2], (d, C), jnp.float32, -s1, s1),
        # PermEqMean(C, C)
        "wg2": jax.random.uniform(k[3], (C, C), jnp.float32, -s2, s2),
        "bg2": jax.random.uniform(k[4], (1, C), jnp.float32, -s2, s2),
        "wl2": jax.random.uniform(k[5], (C, C), jnp.float32, -s2, s2),
    }
    if zero_init_last:
        # PermEqMean(C, d) explicitly zeroed; res weight = -I (as in __init__)
        params["wg3"] = jnp.zeros((C, d), jnp.float32)
        params["bg3"] = jnp.zeros((1, d), jnp.float32)
        params["wl3"] = jnp.zeros((C, d), jnp.float32)
        params["wres"] = -jnp.eye(d, dtype=jnp.float32)
    else:
        params["wg3"] = jax.random.uniform(k[6], (C, d), jnp.float32, -s2, s2)
        params["bg3"] = jax.random.uniform(k[7], (1, d), jnp.float32, -s2, s2)
        params["wl3"] = jax.random.uniform(k[8], (C, d), jnp.float32, -s2, s2)
        params["wres"] = jax.random.uniform(k[9], (d, d), jnp.float32, -s1, s1)
    return params


# ------------------------------ pure-JAX reference ---------------------------

def equivar_drift_ref(x, p):
    def perm_eq_mean(h, wg, bg, wl):
        h_mean = jnp.mean(h, axis=-2, keepdims=True)
        return h @ wg + bg + h_mean @ wl

    h = perm_eq_mean(x, p["wg1"], p["bg1"], p["wl1"])
    h = jnp.clip(h, -1.0, 1.0)
    h = perm_eq_mean(h, p["wg2"], p["bg2"], p["wl2"])
    h = jnp.clip(h, -1.0, 1.0)
    h = perm_eq_mean(h, p["wg3"], p["bg3"], p["wl3"])
    return h + x @ p["wres"]


# ----------------------------------- main ------------------------------------

if __name__ == "__main__":
    B, N, d, C = 2, 16, 4, 32   # batch, set size, feature dim, hidden channels

    key = jax.random.PRNGKey(0)
    kx, kp = jax.random.split(key)
    x = jax.random.normal(kx, (B, N, d), dtype=jnp.float32)

    _, use_bf16, _ = _tpu_info()
    # bf16 matmul operands (v6e/v7x) have ~3 decimal digits; accumulation and
    # all elementwise math remain f32, so these tolerances are comfortable.
    tol_exact = 1e-2 if use_bf16 else 1e-5
    tol_rand = 6e-2 if use_bf16 else 2e-2

    # 1) Faithful-to-__init__ parameters (zeroed last layer, -I residual).
    params = make_params(d, C, kp)
    prepped = prepare_params(params)                    # one-time weight fusion / cast
    out = jax.block_until_ready(equivar_drift(x, prepped))
    ref = equivar_drift_ref(x, params)
    np.testing.assert_allclose(np.asarray(out), np.asarray(ref),
                               rtol=tol_exact, atol=tol_exact)

    # 2) Fully-random parameters: exercises every matmul / mean / residual path.
    params_rnd = make_params(d, C, jax.random.fold_in(kp, 1), zero_init_last=False)
    prepped_rnd = prepare_params(params_rnd)
    out2 = jax.block_until_ready(equivar_drift(x, prepped_rnd))
    ref2 = equivar_drift_ref(x, params_rnd)
    np.testing.assert_allclose(np.asarray(out2), np.asarray(ref2),
                               rtol=tol_rand, atol=tol_rand)

    print("KERNEL_OK")
</pallas_src>

<mosaic_0001>
module attributes {stable_mosaic.version = 11 : i64} {
  func.func @equivar_drift_kernel(%arg0: i32, %arg1: memref<2x16x4xf32, #tpu.memory_space<vmem>>, %arg2: memref<4x68xf32, #tpu.memory_space<vmem>>, %arg3: memref<1x32xf32, #tpu.memory_space<vmem>>, %arg4: memref<32x64xf32, #tpu.memory_space<vmem>>, %arg5: memref<1x32xf32, #tpu.memory_space<vmem>>, %arg6: memref<32x8xf32, #tpu.memory_space<vmem>>, %arg7: memref<1x4xf32, #tpu.memory_space<vmem>>, %arg8: memref<2x16x4xf32, #tpu.memory_space<vmem>>) attributes {dimension_semantics = [#tpu.dimension_semantics<parallel>], iteration_bounds = array<i64: 1>, scalar_prefetch = 0 : i64, scratch_operands = 0 : i64, tpu.core_type = #tpu.core_type<tc>, window_params = [{transform_indices = @transform_0, window_bounds = array<i64: 2, 16, 4>}, {pipeline_mode = #tpu.pipeline_mode<synchronous>, transform_indices = @transform_1, window_bounds = array<i64: 4, 68>}, {pipeline_mode = #tpu.pipeline_mode<synchronous>, transform_indices = @transform_2, window_bounds = array<i64: 1, 32>}, {pipeline_mode = #tpu.pipeline_mode<synchronous>, transform_indices = @transform_3, window_bounds = array<i64: 32, 64>}, {pipeline_mode = #tpu.pipeline_mode<synchronous>, transform_indices = @transform_4, window_bounds = array<i64: 1, 32>}, {pipeline_mode = #tpu.pipeline_mode<synchronous>, transform_indices = @transform_5, window_bounds = array<i64: 32, 8>}, {pipeline_mode = #tpu.pipeline_mode<synchronous>, transform_indices = @transform_6, window_bounds = array<i64: 1, 4>}, {transform_indices = @transform_7, window_bounds = array<i64: 2, 16, 4>}]} {
    %c0 = arith.constant 0 : index
    %c0_0 = arith.constant 0 : index
    %c0_1 = arith.constant 0 : index
    %0 = vector.load %arg1[%c0, %c0_0, %c0_1] : memref<2x16x4xf32, #tpu.memory_space<vmem>>, vector<2x16x4xf32>
    %1 = vector.shape_cast %0 : vector<2x16x4xf32> to vector<32x4xf32>
    %c0_2 = arith.constant 0 : index
    %c0_3 = arith.constant 0 : index
    %2 = vector.load %arg2[%c0_2, %c0_3] : memref<4x68xf32, #tpu.memory_space<vmem>>, vector<4x68xf32>
    %cst = arith.constant dense<0.000000e+00> : vector<32x68xf32>
    %3 = tpu.matmul %1, %2, %cst {dimension_numbers = #tpu.dot_dimension_numbers<[1], [0], [0], [1], [0, 0, 1, 1], [], []>} : vector<32x4xf32>, vector<4x68xf32>, vector<32x68xf32> -> vector<32x68xf32>
    %4 = vector.extract_strided_slice %3 {offsets = [0, 0], sizes = [32, 32], strides = [1, 1]} : vector<32x68xf32> to vector<32x32xf32>
    %5 = vector.shape_cast %4 : vector<32x32xf32> to vector<2x16x32xf32>
    %6 = vector.extract_strided_slice %3 {offsets = [0, 32], sizes = [32, 32], strides = [1, 1]} : vector<32x68xf32> to vector<32x32xf32>
    %7 = vector.shape_cast %6 : vector<32x32xf32> to vector<2x16x32xf32>
    %8 = vector.extract_strided_slice %3 {offsets = [0, 64], sizes = [32, 4], strides = [1, 1]} : vector<32x68xf32> to vector<32x4xf32>
    %c0_4 = arith.constant 0 : index
    %c0_5 = arith.constant 0 : index
    %9 = vector.load %arg3[%c0_4, %c0_5] : memref<1x32xf32, #tpu.memory_space<vmem>>, vector<1x32xf32>
    %10 = vector.shape_cast %9 : vector<1x32xf32> to vector<1x1x32xf32>
    %11 = vector.broadcast %10 : vector<1x1x32xf32> to vector<2x16x32xf32>
    %12 = arith.addf %5, %11 : vector<2x16x32xf32>
    %cst_6 = arith.constant dense<0.000000e+00> : vector<2x32xf32>
    %13 = vector.multi_reduction <add>, %7, %cst_6 [1] : vector<2x16x32xf32> to vector<2x32xf32>
    %14 = vector.shape_cast %13 : vector<2x32xf32> to vector<2x1x32xf32>
    %cst_7 = arith.constant 1.600000e+01 : f32
    %15 = vector.broadcast %cst_7 : f32 to vector<2x1x32xf32>
    %16 = arith.divf %14, %15 : vector<2x1x32xf32>
    %17 = vector.broadcast %16 : vector<2x1x32xf32> to vector<2x16x32xf32>
    %18 = arith.addf %12, %17 : vector<2x16x32xf32>
    %cst_8 = arith.constant -1.000000e+00 : f32
    %cst_9 = arith.constant 1.000000e+00 : f32
    %19 = vector.broadcast %cst_8 : f32 to vector<2x16x32xf32>
    %20 = arith.maximumf %19, %18 : vector<2x16x32xf32>
    %21 = vector.broadcast %cst_9 : f32 to vector<2x16x32xf32>
    %22 = arith.minimumf %21, %20 : vector<2x16x32xf32>
    %23 = vector.shape_cast %22 : vector<2x16x32xf32> to vector<32x32xf32>
    %c0_10 = arith.constant 0 : index
    %c0_11 = arith.constant 0 : index
    %24 = vector.load %arg4[%c0_10, %c0_11] : memref<32x64xf32, #tpu.memory_space<vmem>>, vector<32x64xf32>
    %cst_12 = arith.constant dense<0.000000e+00> : vector<32x64xf32>
    %25 = tpu.matmul %23, %24, %cst_12 {dimension_numbers = #tpu.dot_dimension_numbers<[1], [0], [0], [1], [0, 0, 1, 1], [], []>} : vector<32x32xf32>, vector<32x64xf32>, vector<32x64xf32> -> vector<32x64xf32>
    %26 = vector.extract_strided_slice %25 {offsets = [0, 0], sizes = [32, 32], strides = [1, 1]} : vector<32x64xf32> to vector<32x32xf32>
    %27 = vector.shape_cast %26 : vector<32x32xf32> to vector<2x16x32xf32>
    %28 = vector.extract_strided_slice %25 {offsets = [0, 32], sizes = [32, 32], strides = [1, 1]} : vector<32x64xf32> to vector<32x32xf32>
    %29 = vector.shape_cast %28 : vector<32x32xf32> to vector<2x16x32xf32>
    %c0_13 = arith.constant 0 : index
    %c0_14 = arith.constant 0 : index
    %30 = vector.load %arg5[%c0_13, %c0_14] : memref<1x32xf32, #tpu.memory_space<vmem>>, vector<1x32xf32>
    %31 = vector.shape_cast %30 : vector<1x32xf32> to vector<1x1x32xf32>
    %32 = vector.broadcast %31 : vector<1x1x32xf32> to vector<2x16x32xf32>
    %33 = arith.addf %27, %32 : vector<2x16x32xf32>
    %cst_15 = arith.constant dense<0.000000e+00> : vector<2x32xf32>
    %34 = vector.multi_reduction <add>, %29, %cst_15 [1] : vector<2x16x32xf32> to vector<2x32xf32>
    %35 = vector.shape_cast %34 : vector<2x32xf32> to vector<2x1x32xf32>
    %cst_16 = arith.constant 1.600000e+01 : f32
    %36 = vector.broadcast %cst_16 : f32 to vector<2x1x32xf32>
    %37 = arith.divf %35, %36 : vector<2x1x32xf32>
    %38 = vector.broadcast %37 : vector<2x1x32xf32> to vector<2x16x32xf32>
    %39 = arith.addf %33, %38 : vector<2x16x32xf32>
    %cst_17 = arith.constant -1.000000e+00 : f32
    %cst_18 = arith.constant 1.000000e+00 : f32
    %40 = vector.broadcast %cst_17 : f32 to vector<2x16x32xf32>
    %41 = arith.maximumf %40, %39 : vector<2x16x32xf32>
    %42 = vector.broadcast %cst_18 : f32 to vector<2x16x32xf32>
    %43 = arith.minimumf %42, %41 : vector<2x16x32xf32>
    %44 = vector.shape_cast %43 : vector<2x16x32xf32> to vector<32x32xf32>
    %c0_19 = arith.constant 0 : index
    %c0_20 = arith.constant 0 : index
    %45 = vector.load %arg6[%c0_19, %c0_20] : memref<32x8xf32, #tpu.memory_space<vmem>>, vector<32x8xf32>
    %cst_21 = arith.constant dense<0.000000e+00> : vector<32x8xf32>
    %46 = tpu.matmul %44, %45, %cst_21 {dimension_numbers = #tpu.dot_dimension_numbers<[1], [0], [0], [1], [0, 0, 1, 1], [], []>} : vector<32x32xf32>, vector<32x8xf32>, vector<32x8xf32> -> vector<32x8xf32>
    %47 = vector.extract_strided_slice %46 {offsets = [0, 0], sizes = [32, 4], strides = [1, 1]} : vector<32x8xf32> to vector<32x4xf32>
    %48 = vector.shape_cast %47 : vector<32x4xf32> to vector<2x16x4xf32>
    %49 = vector.extract_strided_slice %46 {offsets = [0, 4], sizes = [32, 4], strides = [1, 1]} : vector<32x8xf32> to vector<32x4xf32>
    %50 = vector.shape_cast %49 : vector<32x4xf32> to vector<2x16x4xf32>
    %c0_22 = arith.constant 0 : index
    %c0_23 = arith.constant 0 : index
    %51 = vector.load %arg7[%c0_22, %c0_23] : memref<1x4xf32, #tpu.memory_space<vmem>>, vector<1x4xf32>
    %52 = vector.shape_cast %51 : vector<1x4xf32> to vector<1x1x4xf32>
    %53 = vector.broadcast %52 : vector<1x1x4xf32> to vector<2x16x4xf32>
    %54 = arith.addf %48, %53 : vector<2x16x4xf32>
    %cst_24 = arith.constant dense<0.000000e+00> : vector<2x4xf32>
    %55 = vector.multi_reduction <add>, %50, %cst_24 [1] : vector<2x16x4xf32> to vector<2x4xf32>
    %56 = vector.shape_cast %55 : vector<2x4xf32> to vector<2x1x4xf32>
    %cst_25 = arith.constant 1.600000e+01 : f32
    %57 = vector.broadcast %cst_25 : f32 to vector<2x1x4xf32>
    %58 = arith.divf %56, %57 : vector<2x1x4xf32>
    %59 = vector.broadcast %58 : vector<2x1x4xf32> to vector<2x16x4xf32>
    %60 = arith.addf %54, %59 : vector<2x16x4xf32>
    %61 = vector.shape_cast %8 : vector<32x4xf32> to vector<2x16x4xf32>
    %62 = arith.addf %60, %61 : vector<2x16x4xf32>
    %c0_26 = arith.constant 0 : index
    %c0_27 = arith.constant 0 : index
    %c0_28 = arith.constant 0 : index
    %63 = vector.load %arg8[%c0_26, %c0_27, %c0_28] : memref<2x16x4xf32, #tpu.memory_space<vmem>>, vector<2x16x4xf32>
    tpu.vector_store %arg8[%c0_26, %c0_27, %c0_28], %62 {strides = array<i32>} : memref<2x16x4xf32, #tpu.memory_space<vmem>>, vector<2x16x4xf32>,
    return
  }
  func.func @transform_0(%arg0: i32) -> (i32, i32, i32) {
    %c0_i32 = arith.constant 0 : i32
    %c0_i32_0 = arith.constant 0 : i32
    %c0_i32_1 = arith.constant 0 : i32
    return %arg0, %c0_i32, %c0_i32_0 : i32, i32, i32
  }
  func.func @transform_1(%arg0: i32) -> (i32, i32) {
    %c0_i32 = arith.constant 0 : i32
    %c0_i32_0 = arith.constant 0 : i32
    %c0_i32_1 = arith.constant 0 : i32
    return %c0_i32, %c0_i32_0 : i32, i32
  }
  func.func @transform_2(%arg0: i32) -> (i32, i32) {
    %c0_i32 = arith.constant 0 : i32
    %c0_i32_0 = arith.constant 0 : i32
    %c0_i32_1 = arith.constant 0 : i32
    return %c0_i32, %c0_i32_0 : i32, i32
  }
  func.func @transform_3(%arg0: i32) -> (i32, i32) {
    %c0_i32 = arith.constant 0 : i32
    %c0_i32_0 = arith.constant 0 : i32
    %c0_i32_1 = arith.constant 0 : i32
    return %c0_i32, %c0_i32_0 : i32, i32
  }
  func.func @transform_4(%arg0: i32) -> (i32, i32) {
    %c0_i32 = arith.constant 0 : i32
    %c0_i32_0 = arith.constant 0 : i32
    %c0_i32_1 = arith.constant 0 : i32
    return %c0_i32, %c0_i32_0 : i32, i32
  }
  func.func @transform_5(%arg0: i32) -> (i32, i32) {
    %c0_i32 = arith.constant 0 : i32
    %c0_i32_0 = arith.constant 0 : i32
    %c0_i32_1 = arith.constant 0 : i32
    return %c0_i32, %c0_i32_0 : i32, i32
  }
  func.func @transform_6(%arg0: i32) -> (i32, i32) {
    %c0_i32 = arith.constant 0 : i32
    %c0_i32_0 = arith.constant 0 : i32
    %c0_i32_1 = arith.constant 0 : i32
    return %c0_i32, %c0_i32_0 : i32, i32
  }
  func.func @transform_7(%arg0: i32) -> (i32, i32, i32) {
    %c0_i32 = arith.constant 0 : i32
    %c0_i32_0 = arith.constant 0 : i32
    %c0_i32_1 = arith.constant 0 : i32
    return %arg0, %c0_i32, %c0_i32_0 : i32, i32, i32
  }
}

</mosaic_0001>

<bundles_post_ra>
// kernel: tpu_custom_call.1
= control target key start
LH: loop header
LB: loop body
LE: loop exit
PB: predicated region body
PF: predicated region fallthrough
CT: control target
= control target key end

     0   :  { %vm44_vm0 = vcmask 1043456   ;;  %vm31_vm1 = vcmask 31744   ;;  %v379_v5 = vmov 16.0   ;;  %vm85_vm2 = vcmask 523520   ;;  %s381_s14 = smov 64   ;;  %s537_s1 = inlined_call_operand.vmem [shape: f32[4,68], index: 1, kind: input, shape index: {}]   ;;  %s538_s0 = inlined_call_operand.vmem [shape: f32[2,16,4], index: 0, kind: input, shape index: {}]   ;;  %s539_s2 = inlined_call_operand.vmem [shape: f32[1,32], index: 2, kind: input, shape index: {}]   ;;  %s540_s3 = inlined_call_operand.vmem [shape: f32[32,64], index: 3, kind: input, shape index: {}]   ;;  %s541_s4 = inlined_call_operand.vmem [shape: f32[1,32], index: 4, kind: input, shape index: {}]   ;;  %s542_s5 = inlined_call_operand.vmem [shape: f32[32,8], index: 5, kind: input, shape index: {}]   ;;  %s543_s6 = inlined_call_operand.vmem [shape: f32[1,4], index: 6, kind: input, shape index: {}]   ;;  %s544_s7 = inlined_call_operand.vmem [shape: f32[2,16,4], index: 7, kind: output, shape index: {}]  }
   0x1   :  { %v30_v0 = vld [vmem:[%s537_s1] sm:$0xf]  ;;  %v27_v2 = vld [vmem:[%s538_s0 + $0x8] sm:$0xff]  ;;  %v28_v3 = vld [vmem:[%s538_s0 + $0x10] sm:$0xff]  ;;  %377 = vrcp.f32 %v379_v5  ;;  %vm137_vm4 = vcmask 261120   ;;  %vm280_vm5 = vcmask 64544  }
   0x2   :  { %v26_v1 = vld [vmem:[%s538_s0] sm:$0xff]  ;;  %341 = vmatpush.msk.msra.mxu0 %vm44_vm0, %v30_v0  ;;  %v29_v4 = vld [vmem:[%s538_s0 + $0x18] sm:$0xff]  ;;  %s380_s0 = smov 96   ;;  %v135_v30 = vld [vmem:[%s540_s3 + $0x10] sm:$0xff] }
   0x3   :  { %342 = vmatmul.msk.f32.vlgmr.msra.gmra.mxu0 %vm31_vm1, %v26_v1  ;;  %v136_v29 = vld [vmem:[%s540_s3 + $0x18] sm:$0xff]  ;;  %v134_v38 = vld [vmem:[%s540_s3 + $0x8] sm:$0xff]  ;;  %v133_v39 = vld [vmem:[%s540_s3] sm:$0xff] }
   0x4   :  { %162 = vmatpush.msra.mxu1 %v136_v29  ;;  %362 = vmatpush.msra.mxu3 %v136_v29  ;;  %v374_v40 = vld [vmem:[%s539_s2] ss:$0 sm:$0xff]  ;;  %v229_v5 = vld [vmem:[%s542_s5 + $0x10] sm:$0xff] }
   0x6   :  { %163 = vmatpush.msra.mxu1 %v135_v30  ;;  %363 = vmatpush.msra.mxu3 %v135_v30 }
   0x7   :  { %v378_v7 = vpop.eup %377 }
   0x8   :  { %v105_v8 = vmul.f32 16.0, %v378_v7  ;;  %vm109_vm3 = vweird.f32 %v378_v7  ;;  %164 = vmatpush.msra.mxu1 %v134_v38  ;;  %364 = vmatpush.msra.mxu3 %v134_v38 }
   0xa   :  { %v106_v12 = vsub.f32 1.0, %v105_v8  ;;  %165 = vmatpush.msra.mxu1 %v133_v39  ;;  %365 = vmatpush.msra.mxu3 %v133_v39 }
   0xb   :  { %343 = vmatmul.msk.f32.gmra.mxu0 %vm31_vm1, %v27_v2 }
   0xc   :  { %v107_v15 = vmul.f32 %v378_v7, %v106_v12 }
   0xe   :  { %v108_v19 = vadd.f32 %v378_v7, %v107_v15 }
  0x10   :  { %v449_v22 = vsel %vm109_vm3, %v378_v7, %v108_v19  ;;  %v228_v19 = vld [vmem:[%s542_s5 + $0x8] sm:$0xff] }
  0x13   :  { %344 = vmatmul.msk.f32.gmra.mxu0 %vm31_vm1, %v28_v3 }
  0x1b   :  { %345 = vmatmul.msk.f32.gmra.mxu0 %vm31_vm1, %v29_v4  ;;  %v230_v4 = vld [vmem:[%s542_s5 + $0x18] sm:$0xff] }
  0x1c   :  { %255 = vmatpush.msrb.mxu1 %v230_v4  ;;  %366 = vmatpush.msra.mxu2 %v230_v4 }
  0x1e   :  { %256 = vmatpush.msrb.mxu1 %v229_v5  ;;  %367 = vmatpush.msra.mxu2 %v229_v5 }
  0x20   :  { %257 = vmatpush.msrb.mxu1 %v228_v19  ;;  %368 = vmatpush.msra.mxu2 %v228_v19 }
  0x80   :  { %v65_v6 = vpop.f32.mrf.mxu0 }
  0x81   :  { %v86_v10 = vsel %vm85_vm2, %v65_v6, 0.0  ;;  %v81_v41 = vadd.f32 %v374_v40, %v65_v6 }
  0x88   :  { %v442_v9 = vpop.f32.mrf.mxu0 }
  0x89   :  { %v87_v11 = vsel %vm85_vm2, %v442_v9, 0.0  ;;  %v82_v42 = vadd.f32 %v374_v40, %v442_v9 }
  0x8a   :  { %v88_v13 = vadd.f32 %v87_v11, %v86_v10 }
  0x8c   :  { %v89_v14 = vrot.slane %v88_v13, 4 }
  0x8e   :  { %v90_v16 = vadd.f32 %v89_v14, %v88_v13 }
  0x90   :  { %v447_v17 = vpop.f32.mrf.mxu0  ;;  %v91_v18 = vrot.slane %v90_v16, 2 }
  0x91   :  { %v95_v26 = vsel %vm85_vm2, %v447_v17, 0.0  ;;  %v83_v48 = vadd.f32 %v374_v40, %v447_v17 }
  0x92   :  { %v92_v20 = vadd.f32 %v91_v18, %v90_v16 }
  0x94   :  { %v93_v21 = vrot.slane %v92_v20, 1 }
  0x96   :  { %v94_v23 = vadd.f32 %v93_v21, %v92_v20  ;;  %v227_v20 = vld [vmem:[%s542_s5] sm:$0xff] }
  0x97   :  { %258 = vmatpush.msrb.mxu1 %v227_v20  ;;  %369 = vmatpush.msra.mxu2 %v227_v20  ;;  %v375_v21 = vld [vmem:[%s541_s4] ss:$0 sm:$0xff]  ;;  %s382_s4 = smov 124  }
  0x98   :  { %v74_v24 = vpop.f32.mrf.mxu0  ;;  %v111_v25 = vmul.f32 %v449_v22, %v94_v23 }
  0x99   :  { %v96_v27 = vsel %vm85_vm2, %v74_v24, 0.0  ;;  %v84_v52 = vadd.f32 %v374_v40, %v74_v24 }
  0x9a   :  { %v97_v28 = vadd.f32 %v96_v27, %v95_v26  ;;  %115 = vrot.lane.b32.xlu0 %v111_v25, %s380_s0 }
  0x9c   :  { %v98_v31 = vrot.slane %v97_v28, 4 }
  0x9e   :  { %v99_v32 = vadd.f32 %v98_v31, %v97_v28 }
  0xa0   :  { %v100_v33 = vrot.slane %v99_v32, 2 }
  0xa2   :  { %v101_v34 = vadd.f32 %v100_v33, %v99_v32 }
  0xa4   :  { %v102_v35 = vrot.slane %v101_v34, 1 }
  0xa6   :  { %v103_v36 = vadd.f32 %v102_v35, %v101_v34 }
  0xa8   :  { %v112_v37 = vmul.f32 %v449_v22, %v103_v36 }
  0xaa   :  { %117 = vrot.lane.b32.xlu0 %v112_v37, %s380_s0 }
  0xb2   :  { %317 = vrot.lane.b32.xlu0 %v65_v6, %s381_s14 }
  0xba   :  { %323 = vrot.lane.b32.xlu0 %v74_v24, %s381_s14 }
 0x10c   :  { %v116_v43 = vpop.permute.xlu0 %115 }
 0x10d   :  { %v121_v44 = vadd.f32 %v116_v43, %v81_v41  ;;  %v122_v45 = vadd.f32 %v116_v43, %v82_v42 }
 0x10f   :  { %v346_v46 = vclamps-f32 %v121_v44, 1.0  ;;  %v347_v47 = vclamps-f32 %v122_v45, 1.0 }
 0x111   :  { %350 = vmatmul.msk.f32.vlgmr.msra.gmra.mxu1 %vm137_vm4, %v346_v46  ;;  %351 = vmatmul.msk.f32.vlgmr.msra.gmra.mxu3 %vm137_vm4, %v347_v47 }
 0x11c   :  { %v118_v49 = vpop.permute.xlu0 %117 }
 0x11d   :  { %v123_v50 = vadd.f32 %v118_v49, %v83_v48  ;;  %v124_v53 = vadd.f32 %v118_v49, %v84_v52 }
 0x11f   :  { %v348_v51 = vclamps-f32 %v123_v50, 1.0  ;;  %v349_v54 = vclamps-f32 %v124_v53, 1.0 }
 0x121   :  { %352 = vmatmul.msk.f32.gmra.mxu3 %vm137_vm4, %v348_v51 }
 0x129   :  { %353 = vmatmul.msk.f32.gmra.mxu3 %vm137_vm4, %v349_v54 }
 0x18e   :  { %v167_v55 = vpop.f32.mrf.mxu1 }
 0x18f   :  { %v187_v57 = vsel %vm85_vm2, %v167_v55, 0.0  ;;  %v183_v23 = vadd.f32 %v375_v21, %v167_v55 }
 0x194   :  { %v170_v56 = vpop.f32.mrf.mxu3 }
 0x195   :  { %v188_v58 = vsel %vm85_vm2, %v170_v56, 0.0  ;;  %v184_v24 = vadd.f32 %v375_v21, %v170_v56 }
 0x196   :  { %v189_v59 = vadd.f32 %v188_v58, %v187_v57 }
 0x198   :  { %v190_v60 = vrot.slane %v189_v59, 4 }
 0x19a   :  { %v191_v61 = vadd.f32 %v190_v60, %v189_v59  ;;  %v376_v60 = vld [vmem:[%s543_s6] ss:$0 sm:$0xff] }
 0x19c   :  { %v192_v62 = vrot.slane %v191_v61, 2 }
 0x19e   :  { %v193_v63 = vadd.f32 %v192_v62, %v191_v61 }
 0x1a0   :  { %v194_v0 = vrot.slane %v193_v63, 1 }
 0x1a2   :  { %v195_v1 = vadd.f32 %v194_v0, %v193_v63 }
 0x1a4   :  { %v173_v2 = vpop.f32.mrf.mxu3  ;;  %v205_v3 = vmul.f32 %v195_v1, %v449_v22 }
 0x1a5   :  { %v196_v7 = vsel %vm85_vm2, %v173_v2, 0.0  ;;  %v185_v29 = vadd.f32 %v375_v21, %v173_v2  ;;  %v318_v2 = vpop.permute.xlu0 %317 }
 0x1a6   :  { %209 = vrot.lane.b32.xlu1 %v205_v3, %s380_s0 }
 0x1ac   :  { %v176_v6 = vpop.f32.mrf.mxu3 }
 0x1ad   :  { %v197_v8 = vsel %vm85_vm2, %v176_v6, 0.0  ;;  %v186_v33 = vadd.f32 %v375_v21, %v176_v6 }
 0x1ae   :  { %v198_v10 = vadd.f32 %v197_v8, %v196_v7  ;;  %v324_v7 = vpop.permute.xlu0 %323 }
 0x1b0   :  { %v199_v11 = vrot.slane %v198_v10, 4 }
 0x1b2   :  { %v200_v12 = vadd.f32 %v199_v11, %v198_v10 }
 0x1b4   :  { %v201_v13 = vrot.slane %v200_v12, 2 }
 0x1b6   :  { %v202_v14 = vadd.f32 %v201_v13, %v200_v12 }
 0x1b8   :  { %v203_v15 = vrot.slane %v202_v14, 1 }
 0x1ba   :  { %v204_v16 = vadd.f32 %v203_v15, %v202_v14 }
 0x1bc   :  { %v206_v18 = vmul.f32 %v204_v16, %v449_v22 }
 0x1be   :  { %211 = vrot.lane.b32.xlu1 %v206_v18, %s380_s0 }
 0x1c6   :  { %319 = vrot.lane.b32.xlu1 %v442_v9, %s381_s14 }
 0x218   :  { %v210_v25 = vpop.permute.xlu1 %209 }
 0x219   :  { %v215_v9 = vadd.f32 %v210_v25, %v183_v23  ;;  %v216_v26 = vadd.f32 %v210_v25, %v184_v24 }
 0x21b   :  { %v354_v27 = vclamps-f32 %v215_v9, 1.0  ;;  %v355_v28 = vclamps-f32 %v216_v26, 1.0 }
 0x21d   :  { %358 = vmatmul.msk.f32.vlgmr.msrb.gmra.mxu1 %vm137_vm4, %v354_v27  ;;  %359 = vmatmul.msk.f32.vlgmr.msra.gmra.mxu2 %vm137_vm4, %v355_v28 }
 0x230   :  { %v212_v30 = vpop.permute.xlu1 %211 }
 0x231   :  { %v217_v31 = vadd.f32 %v212_v30, %v185_v29  ;;  %v218_v34 = vadd.f32 %v212_v30, %v186_v33 }
 0x233   :  { %v356_v32 = vclamps-f32 %v217_v31, 1.0  ;;  %v357_v35 = vclamps-f32 %v218_v34, 1.0 }
 0x235   :  { %360 = vmatmul.msk.f32.gmra.mxu2 %vm137_vm4, %v356_v32 }
 0x238   :  { %v320_v3 = vpop.permute.xlu1 %319 }
 0x23d   :  { %361 = vmatmul.msk.f32.gmra.mxu2 %vm137_vm4, %v357_v35 }
 0x29a   :  { %v260_v36 = vpop.f32.mrf.mxu1 }
 0x29b   :  { %v281_v38 = vsel %vm280_vm5, %v260_v36, 0.0  ;;  %v276_v61 = vadd.f32 %v376_v60, %v260_v36 }
 0x2a0   :  { %v263_v37 = vpop.f32.mrf.mxu2 }
 0x2a1   :  { %v282_v39 = vsel %vm280_vm5, %v263_v37, 0.0  ;;  %v277_v62 = vadd.f32 %v376_v60, %v263_v37 }
 0x2a2   :  { %v283_v40 = vadd.f32 %v282_v39, %v281_v38 }
 0x2a4   :  { %v284_v41 = vrot.slane %v283_v40, 4 }
 0x2a6   :  { %v285_v42 = vadd.f32 %v284_v41, %v283_v40 }
 0x2a8   :  { %v286_v43 = vrot.slane %v285_v42, 2 }
 0x2aa   :  { %v287_v44 = vadd.f32 %v286_v43, %v285_v42 }
 0x2ac   :  { %v288_v45 = vrot.slane %v287_v44, 1 }
 0x2ae   :  { %v289_v46 = vadd.f32 %v288_v45, %v287_v44 }
 0x2b0   :  { %v299_v47 = vmul.f32 %v289_v46, %v449_v22 }
 0x2b2   :  { %303 = vrot.lane.b32.xlu2 %v299_v47, %s382_s4 }
 0x2b8   :  { %v266_v48 = vpop.f32.mrf.mxu2 }
 0x2b9   :  { %v290_v50 = vsel %vm280_vm5, %v266_v48, 0.0  ;;  %v278_v10 = vadd.f32 %v376_v60, %v266_v48 }
 0x2c0   :  { %v269_v49 = vpop.f32.mrf.mxu2 }
 0x2c1   :  { %v291_v51 = vsel %vm280_vm5, %v269_v49, 0.0 }
 0x2c2   :  { %v292_v52 = vadd.f32 %v291_v51, %v290_v50 }
 0x2c4   :  { %v293_v53 = vrot.slane %v292_v52, 4 }
 0x2c6   :  { %v294_v54 = vadd.f32 %v293_v53, %v292_v52 }
 0x2c8   :  { %v295_v55 = vrot.slane %v294_v54, 2 }
 0x2ca   :  { %v296_v56 = vadd.f32 %v295_v55, %v294_v54 }
 0x2cc   :  { %v297_v57 = vrot.slane %v296_v56, 1 }
 0x2ce   :  { %v298_v58 = vadd.f32 %v297_v57, %v296_v56 }
 0x2d0   :  { %v300_v59 = vmul.f32 %v298_v58, %v449_v22 }
 0x2d2   :  { %305 = vrot.lane.b32.xlu2 %v300_v59, %s382_s4 }
 0x2da   :  { %321 = vrot.lane.b32.xlu2 %v447_v17, %s381_s14  ;;  %v279_v17 = vadd.f32 %v376_v60, %v269_v49 }
 0x30c   :  { %v304_v63 = vpop.permute.xlu2 %303 }
 0x30d   :  { %v309_v0 = vadd.f32 %v304_v63, %v276_v61  ;;  %v310_v1 = vadd.f32 %v304_v63, %v277_v62 }
 0x30f   :  { %v329_v4 = vadd.f32 %v318_v2, %v309_v0  ;;  %v330_v5 = vadd.f32 %v320_v3, %v310_v1 }
 0x311   :  { %333 = vst.msk [vmem:[%s544_s7] sm:$0xff] %vm31_vm1, %v329_v4 }
 0x312   :  { %334 = vst.msk [vmem:[%s544_s7 + $0x8] sm:$0xff] %vm31_vm1, %v330_v5 }
 0x32c   :  { %v306_v22 = vpop.permute.xlu2 %305 }
 0x32d   :  { %v312_v6 = vadd.f32 %v306_v22, %v279_v17  ;;  %v311_v11 = vadd.f32 %v306_v22, %v278_v10 }
 0x32f   :  { %v332_v8 = vadd.f32 %v324_v7, %v312_v6 }
 0x331   :  { %336 = vst.msk [vmem:[%s544_s7 + $0x18] sm:$0xff] %vm31_vm1, %v332_v8 }
 0x334   :  { %v322_v12 = vpop.permute.xlu2 %321 }
 0x335   :  { %v331_v13 = vadd.f32 %v322_v12, %v311_v11 }
 0x337   :  { %335 = vst.msk [vmem:[%s544_s7 + $0x10] sm:$0xff] %vm31_vm1, %v331_v13 }

</bundles_post_ra>
